<compile_context>
chip_gen: v7x
topology: tpu7x:2x2x1
jax: 0.10.0
libtpu: 0.0.40
codegen_flags: <defaults>
</compile_context>

<pallas_src>
import jax
import jax.numpy as jnp
from jax.experimental import pallas as pl
from jax.experimental.pallas import tpu as pltpu


# ----------------------------- math helpers ------------------------------ #

def _softplus(x):
    # Matches torch.nn.Softplus(beta=1, threshold=20):
    #   x               if x > 20
    #   log1p(exp(x))   otherwise
    # (exp(x) past the threshold is computed but discarded by the where; safe.)
    return jnp.where(x > 20.0, x, jnp.log1p(jnp.exp(x)))


def _sigmoid(x):
    # tanh-form sigmoid: a single EUP op, self-saturating (no clip needed).
    return 0.5 * (jnp.tanh(0.5 * x) + 1.0)


# ------------------------------- kernel ---------------------------------- #

def ppca_decoder_kernel(z_ref, w1_ref, b1_ref, w2_ref, b2_ref, o_ref):
    # fc1: [Bt, Z](bf16) @ [Z, H](bf16) -> f32 accumulate
    h = jnp.dot(z_ref[...], w1_ref[...], preferred_element_type=jnp.float32)
    h = _softplus(h + b1_ref[...])            # element-wise in f32
    # dropout (eval mode) == identity
    # fc21: [Bt, H](bf16) @ [H, D](bf16) -> f32 accumulate
    out = jnp.dot(h.astype(w2_ref.dtype), w2_ref[...],
                  preferred_element_type=jnp.float32)
    o_ref[...] = _sigmoid(out + b2_ref[...]).astype(o_ref.dtype)


# ------------------------------ wrapper ----------------------------------- #

def _round_up(x, m):
    return (x + m - 1) // m * m


def _num_tensorcores():
    """2 for v7x megacore, else 1 (v5e/v6e). Defensive: default to 1."""
    try:
        kind = jax.devices()[0].device_kind.lower()
    except Exception:
        return 1
    return 2 if "v7" in kind else 1


def _choose_block_b(B, num_tc, target=1024):
    """Pick a batch tile. With a cdiv grid the tile need not divide B; it only
    has to be a multiple of 8 (or equal B for a single tile)."""
    if B <= 8:
        return B
    if num_tc <= 1:
        # Single TensorCore: the grid is a serial loop -> fewer, bigger steps.
        return B if B <= target else target
    # Dual-TC v7x: only split once the batch is big enough to matter, and use an
    # EVEN number of "parallel" grid steps so both cores get balanced work.
    if B < 128:
        return B
    steps = max(2, 2 * pl.cdiv(pl.cdiv(B, target), 2))     # even, >= 2
    return min(target, _round_up(pl.cdiv(B, steps), 8))


def prepare_params(w1_t, b1, w2_t, b2):
    """One-time parameter prep (hoist out of the forward path):
    weights -> bf16 [in, out], biases -> f32 [1, out]."""
    return (jnp.asarray(w1_t, jnp.bfloat16),
            jnp.asarray(b1, jnp.float32).reshape(1, -1),
            jnp.asarray(w2_t, jnp.bfloat16),
            jnp.asarray(b2, jnp.float32).reshape(1, -1))


def ppca_decoder(z, w1_t, b1, w2_t, b2, *, block_b=None, out_dtype=jnp.bfloat16):
    """z: [B, z_dim]; w1_t: [z_dim, H]; b1: [1, H]; w2_t: [H, D]; b2: [1, D].

    Weights are expected pre-transposed ([in, out]); pass them through
    prepare_params() once so no per-call casts/pads are launched. Returns
    sigmoid(fc21(softplus(fc1(z)))) with dropout as identity (eval mode).
    """
    B, Z = z.shape
    H = w1_t.shape[1]
    D = w2_t.shape[1]

    # Only convert if the caller did not pre-prepare (cheap no-op otherwise).
    if w1_t.dtype != jnp.bfloat16:
        w1_t = w1_t.astype(jnp.bfloat16)
    if w2_t.dtype != jnp.bfloat16:
        w2_t = w2_t.astype(jnp.bfloat16)
    b1 = jnp.asarray(b1, jnp.float32).reshape(1, H)
    b2 = jnp.asarray(b2, jnp.float32).reshape(1, D)
    z_bf = z.astype(jnp.bfloat16)            # z is tiny ([B, z_dim]); cheap.

    num_tc = _num_tensorcores()
    if block_b is None:
        block_b = _choose_block_b(B, num_tc)
    block_b = min(block_b, B)
    if block_b != B:
        assert block_b % 8 == 0, "tiled batch blocks must be a multiple of 8"

    grid = (pl.cdiv(B, block_b),)            # ragged last tile handled by Pallas
    out = pl.pallas_call(
        ppca_decoder_kernel,
        out_shape=jax.ShapeDtypeStruct((B, D), out_dtype),
        grid=grid,
        in_specs=[
            pl.BlockSpec((block_b, Z), lambda i: (i, 0)),   # z tile (streamed)
            pl.BlockSpec((Z, H), lambda i: (0, 0)),         # fc1 weight^T (resident)
            pl.BlockSpec((1, H), lambda i: (0, 0)),         # fc1 bias (resident)
            pl.BlockSpec((H, D), lambda i: (0, 0)),         # fc21 weight^T (resident)
            pl.BlockSpec((1, D), lambda i: (0, 0)),         # fc21 bias (resident)
        ],
        out_specs=pl.BlockSpec((block_b, D), lambda i: (i, 0)),
        compiler_params=pltpu.CompilerParams(
            dimension_semantics=("parallel",),
        ),
    )(z_bf, w1_t, b1, w2_t, b2)
    return out


def init_params(key, z_dim, hidden_dim, data_dim):
    """Deterministic init mimicking nn.Linear's uniform(-1/sqrt(fan_in), +)."""
    k1, k2, k3, k4 = jax.random.split(key, 4)
    lim1 = 1.0 / (z_dim ** 0.5)
    lim2 = 1.0 / (hidden_dim ** 0.5)
    # Stored already transposed: [in, out]
    w1_t = jax.random.uniform(k1, (z_dim, hidden_dim), jnp.float32, -lim1, lim1)
    b1 = jax.random.uniform(k2, (1, hidden_dim), jnp.float32, -lim1, lim1)
    w2_t = jax.random.uniform(k3, (hidden_dim, data_dim), jnp.float32, -lim2, lim2)
    b2 = jax.random.uniform(k4, (1, data_dim), jnp.float32, -lim2, lim2)
    return w1_t, b1, w2_t, b2


if __name__ == "__main__":
    # Small shapes consistent with the module. D=200 (not a multiple of 128)
    # exercises the masked-vst tail path (no padding, no post-kernel slice).
    B, Z, H, D = 16, 8, 32, 200

    key = jax.random.PRNGKey(0)
    kz, kp = jax.random.split(key)
    z = jax.random.normal(kz, (B, Z), dtype=jnp.float32)
    w1_t, b1, w2_t, b2 = init_params(kp, Z, H, D)
    w1b, b1f, w2b, b2f = prepare_params(w1_t, b1, w2_t, b2)

    # Auto tile (grid=(1,) on single-TC chips; B < 128 so also (1,) on v7x).
    out = jax.block_until_ready(ppca_decoder(z, w1b, b1f, w2b, b2f))
    # Explicit small tile -> tiled grid path (grid=(2,)).
    out_tiled = jax.block_until_ready(ppca_decoder(z, w1b, b1f, w2b, b2f, block_b=8))
    # Ragged batch (12 rows, tile 8) -> cdiv grid with masked last tile.
    out_ragged = jax.block_until_ready(ppca_decoder(z[:12], w1b, b1f, w2b, b2f,
                                                    block_b=8))

    assert out.shape == (B, D) and out.dtype == jnp.bfloat16
    assert out_tiled.shape == (B, D)
    assert out_ragged.shape == (12, D)

    # Reference 1: bf16-consistent (same casts as the kernel's streaming path).
    zb = z.astype(jnp.bfloat16)
    h_ref = _softplus(jnp.dot(zb, w1b, preferred_element_type=jnp.float32) + b1f)
    logits = jnp.dot(h_ref.astype(jnp.bfloat16), w2b,
                     preferred_element_type=jnp.float32) + b2f
    ref_bf16 = jax.nn.sigmoid(logits)

    out_f = out.astype(jnp.float32)
    err = float(jnp.max(jnp.abs(out_f - ref_bf16)))
    assert jnp.allclose(out_f, ref_bf16, atol=2e-2, rtol=0.0), err
    assert jnp.allclose(out_tiled.astype(jnp.float32), ref_bf16, atol=2e-2, rtol=0.0)
    assert jnp.allclose(out_ragged.astype(jnp.float32), ref_bf16[:12],
                        atol=2e-2, rtol=0.0)

    # Reference 2: full-f32 PyTorch-equivalent eval forward (loose tolerance for
    # bf16 streaming + bf16 output).
    ref_f32 = jax.nn.sigmoid(_softplus(z @ w1_t + b1) @ w2_t + b2)
    assert jnp.allclose(out_f, ref_f32, atol=5e-2, rtol=0.0)

    print("KERNEL_OK")
</pallas_src>

<mosaic_0001>
module attributes {stable_mosaic.version = 11 : i64} {
  func.func @ppca_decoder_kernel(%arg0: i32, %arg1: memref<16x8xbf16, #tpu.memory_space<vmem>>, %arg2: memref<8x32xbf16, #tpu.memory_space<vmem>>, %arg3: memref<1x32xf32, #tpu.memory_space<vmem>>, %arg4: memref<32x200xbf16, #tpu.memory_space<vmem>>, %arg5: memref<1x200xf32, #tpu.memory_space<vmem>>, %arg6: memref<16x200xbf16, #tpu.memory_space<vmem>>) attributes {dimension_semantics = [#tpu.dimension_semantics<parallel>], iteration_bounds = array<i64: 1>, scalar_prefetch = 0 : i64, scratch_operands = 0 : i64, tpu.core_type = #tpu.core_type<tc>, window_params = [{transform_indices = @transform_0, window_bounds = array<i64: 16, 8>}, {pipeline_mode = #tpu.pipeline_mode<synchronous>, transform_indices = @transform_1, window_bounds = array<i64: 8, 32>}, {pipeline_mode = #tpu.pipeline_mode<synchronous>, transform_indices = @transform_2, window_bounds = array<i64: 1, 32>}, {pipeline_mode = #tpu.pipeline_mode<synchronous>, transform_indices = @transform_3, window_bounds = array<i64: 32, 200>}, {pipeline_mode = #tpu.pipeline_mode<synchronous>, transform_indices = @transform_4, window_bounds = array<i64: 1, 200>}, {transform_indices = @transform_5, window_bounds = array<i64: 16, 200>}]} {
    %c0 = arith.constant 0 : index
    %c0_0 = arith.constant 0 : index
    %0 = vector.load %arg1[%c0, %c0_0] : memref<16x8xbf16, #tpu.memory_space<vmem>>, vector<16x8xbf16>
    %c0_1 = arith.constant 0 : index
    %c0_2 = arith.constant 0 : index
    %1 = vector.load %arg2[%c0_1, %c0_2] : memref<8x32xbf16, #tpu.memory_space<vmem>>, vector<8x32xbf16>
    %cst = arith.constant dense<0.000000e+00> : vector<16x32xf32>
    %2 = tpu.matmul %0, %1, %cst {dimension_numbers = #tpu.dot_dimension_numbers<[1], [0], [0], [1], [0, 0, 1, 1], [], []>} : vector<16x8xbf16>, vector<8x32xbf16>, vector<16x32xf32> -> vector<16x32xf32>
    %c0_3 = arith.constant 0 : index
    %c0_4 = arith.constant 0 : index
    %3 = vector.load %arg3[%c0_3, %c0_4] : memref<1x32xf32, #tpu.memory_space<vmem>>, vector<1x32xf32>
    %4 = vector.broadcast %3 : vector<1x32xf32> to vector<16x32xf32>
    %5 = arith.addf %2, %4 : vector<16x32xf32>
    %cst_5 = arith.constant 2.000000e+01 : f32
    %6 = vector.broadcast %cst_5 : f32 to vector<16x32xf32>
    %7 = arith.cmpf ogt, %5, %6 : vector<16x32xf32>
    %8 = math.exp %5 : vector<16x32xf32>
    %9 = math.log1p %8 : vector<16x32xf32>
    %10 = arith.select %7, %5, %9 : vector<16x32xi1>, vector<16x32xf32>
    %11 = arith.truncf %10 : vector<16x32xf32> to vector<16x32xbf16>
    %c0_6 = arith.constant 0 : index
    %c0_7 = arith.constant 0 : index
    %12 = vector.load %arg4[%c0_6, %c0_7] : memref<32x200xbf16, #tpu.memory_space<vmem>>, vector<32x200xbf16>
    %cst_8 = arith.constant dense<0.000000e+00> : vector<16x200xf32>
    %13 = tpu.matmul %11, %12, %cst_8 {dimension_numbers = #tpu.dot_dimension_numbers<[1], [0], [0], [1], [0, 0, 1, 1], [], []>} : vector<16x32xbf16>, vector<32x200xbf16>, vector<16x200xf32> -> vector<16x200xf32>
    %c0_9 = arith.constant 0 : index
    %c0_10 = arith.constant 0 : index
    %14 = vector.load %arg5[%c0_9, %c0_10] : memref<1x200xf32, #tpu.memory_space<vmem>>, vector<1x200xf32>
    %15 = vector.broadcast %14 : vector<1x200xf32> to vector<16x200xf32>
    %16 = arith.addf %13, %15 : vector<16x200xf32>
    %cst_11 = arith.constant 5.000000e-01 : f32
    %17 = vector.broadcast %cst_11 : f32 to vector<16x200xf32>
    %18 = arith.mulf %17, %16 : vector<16x200xf32>
    %19 = math.tanh %18 : vector<16x200xf32>
    %cst_12 = arith.constant 1.000000e+00 : f32
    %20 = vector.broadcast %cst_12 : f32 to vector<16x200xf32>
    %21 = arith.addf %19, %20 : vector<16x200xf32>
    %cst_13 = arith.constant 5.000000e-01 : f32
    %22 = vector.broadcast %cst_13 : f32 to vector<16x200xf32>
    %23 = arith.mulf %22, %21 : vector<16x200xf32>
    %24 = arith.truncf %23 : vector<16x200xf32> to vector<16x200xbf16>
    %c0_14 = arith.constant 0 : index
    %c0_15 = arith.constant 0 : index
    %25 = vector.load %arg6[%c0_14, %c0_15] : memref<16x200xbf16, #tpu.memory_space<vmem>>, vector<16x200xbf16>
    tpu.vector_store %arg6[%c0_14, %c0_15], %24 {strides = array<i32>} : memref<16x200xbf16, #tpu.memory_space<vmem>>, vector<16x200xbf16>,
    return
  }
  func.func @transform_0(%arg0: i32) -> (i32, i32) {
    %c0_i32 = arith.constant 0 : i32
    %c0_i32_0 = arith.constant 0 : i32
    return %arg0, %c0_i32 : i32, i32
  }
  func.func @transform_1(%arg0: i32) -> (i32, i32) {
    %c0_i32 = arith.constant 0 : i32
    %c0_i32_0 = arith.constant 0 : i32
    %c0_i32_1 = arith.constant 0 : i32
    return %c0_i32, %c0_i32_0 : i32, i32
  }
  func.func @transform_2(%arg0: i32) -> (i32, i32) {
    %c0_i32 = arith.constant 0 : i32
    %c0_i32_0 = arith.constant 0 : i32
    %c0_i32_1 = arith.constant 0 : i32
    return %c0_i32, %c0_i32_0 : i32, i32
  }
  func.func @transform_3(%arg0: i32) -> (i32, i32) {
    %c0_i32 = arith.constant 0 : i32
    %c0_i32_0 = arith.constant 0 : i32
    %c0_i32_1 = arith.constant 0 : i32
    return %c0_i32, %c0_i32_0 : i32, i32
  }
  func.func @transform_4(%arg0: i32) -> (i32, i32) {
    %c0_i32 = arith.constant 0 : i32
    %c0_i32_0 = arith.constant 0 : i32
    %c0_i32_1 = arith.constant 0 : i32
    return %c0_i32, %c0_i32_0 : i32, i32
  }
  func.func @transform_5(%arg0: i32) -> (i32, i32) {
    %c0_i32 = arith.constant 0 : i32
    %c0_i32_0 = arith.constant 0 : i32
    return %arg0, %c0_i32 : i32, i32
  }
}

</mosaic_0001>

<bundles_post_ra>
// kernel: tpu_custom_call.1
= control target key start
LH: loop header
LB: loop body
LE: loop exit
PB: predicated region body
PF: predicated region fallthrough
CT: control target
= control target key end

     0   :  { %10 = vsyncpa [#allocation3], 0  ;;  %s438_s0 = inlined_call_operand.vmem [shape: bf16[16,8], index: 0, kind: input, shape index: {}]   ;;  %s439_s1 = inlined_call_operand.vmem [shape: bf16[8,32], index: 1, kind: input, shape index: {}]   ;;  %s440_s2 = inlined_call_operand.vmem [shape: f32[1,32], index: 2, kind: input, shape index: {}]   ;;  %s441_s3 = inlined_call_operand.hbm [shape: bf16[32,200], index: 3, kind: input, shape index: {}]   ;;  %s442_s4 = inlined_call_operand.vmem [shape: f32[1,200], index: 4, kind: input, shape index: {}]   ;;  %s443_s5 = inlined_call_operand.hbm [shape: bf16[16,200], index: 5, kind: output, shape index: {}]  }
   0x1   :  { %11 = vsyncpa [#allocation4], 0  ;;  %s357_s18 = smov [#allocation2]   ;;  %s309_s22 = scalar_lea.hbm %s441_s3, 512 }
   0x2   :  { %s23_s19 = sshll.u32 %s357_s18, 4  ;;  %p310_p0 = scmp.ne.s32.totalorder %s441_s3, %s309_s22  ;;  %s24_s19 = int_to_ptr.vmem [resolvable:$true] %s23_s19 }
   0x3   :  { %p313_p1 = scmp.lt.u32.totalorder %s309_s22, %s441_s3 }
   0x5   :  { %p315_p2 = pnand %p313_p1, %p310_p0 }
   0x7   :  { %318 = shalt.err (!%p315_p2)
}
   0x8   :  { %s319_s27 = scalar_lea.vmem %s24_s19, 512  ;;  %p324_p4 = scmp.lt.s32.totalorder %s24_s19, %s24_s19 }
   0x9   :  { %p320_p3 = scmp.ne.s32.totalorder %s24_s19, %s319_s27  ;;  %p325_p5 = scmp.lt.s32.totalorder %s319_s27, %s319_s27 }
   0xb   :  { %p326_p6 = por %p325_p5, %p324_p4 }
   0xd   :  { %p327_p7 = pnand %p326_p6, %p320_p3 }
   0xf   :  { %330 = shalt.err (!%p327_p7)
}
  0x10   :  { %s358_s28 = smov 128   ;;  %s359_s29 = smov 8  }
  0x11   :  { %29 = dma.hbm_to_vmem [thread:$0]  %s441_s3, 512, %s24_s19, [#allocation3], %s358_s28, %s358_s28, %s359_s29  }
  0x12   :  { %353 = dma.done.wait [#allocation3], 512  }
  0x13   :  { %354 = vsyncadd [#allocation3], 4294966784  ;;  %v360_v0 = vmov 0.0   ;;  %vm361_vm0 = vmmov 0   ;;  %vm55_vm1 = vcmask 1043456   ;;  %v286_v3 = vld [vmem:[%s438_s0] sm:$0xff]   ;;  %v133_v39 = vlaneseq }
  0x14   :  { %273 = vmatprep.subr.bf16.mxu0 %v360_v0  ;;  %275 = vmatprep.mubr.msk.bf16.mxu0 %vm361_vm0, %v360_v0  ;;  %v38_v1 = vld [vmem:[%s439_s1] sm:$0xf]  ;;  %vm51_vm2 = vcmask 64512   ;;  %v287_v4 = vld [vmem:[#allocation2 + $0x4] ss:$8 sps:$4 sm:$0xff]   ;;  %v362_v8 = vmov 0  }
  0x15   :  { %v57_v2 = vsel %vm55_vm1, %v38_v1, 0  ;;  %v289_v5 = vld [vmem:[#allocation2] ss:$8 sps:$4 sm:$0xff]   ;;  %167 = vmatprep.subr.bf16.mxu1 %v287_v4  ;;  %v290_v6 = vld [vmem:[#allocation2 + $0x14] ss:$8 sps:$4 sm:$0xff]   ;;  %199 = vmatprep.mubr.bf16.mxu1 %v362_v8  ;;  %vm163_vm7 = vcmask 261120  }
  0x16   :  { %274 = vmatpush3.bf16.msra.mxu0 %v57_v2  ;;  %168 = vmatpush1.bf16.msra.mxu1 %v289_v5  ;;  %v292_v7 = vld [vmem:[#allocation2 + $0x10] ss:$8 sps:$4 sm:$0xff]   ;;  %v259_v9 = vld [vmem:[%s440_s2] ss:$0 sm:$0xff]  ;;  %v134_v40 = vshrl.u32 %v133_v39, 7  ;;  %vm238_vm8 = vcmask 588804  }
  0x17   :  { %169 = vmatprep.subr.bf16.mxu1 %v290_v6  ;;  %v131_v42 = vld [vmem:[%s442_s4] sm:$0x3]  ;;  %vm239_vm9 = vmor %vm238_vm8, %vm55_vm1  ;;  %s363_s4 = smov [#allocation5]  }
  0x18   :  { %v135_v41 = vsub.s32 0, %v134_v40  ;;  %v139_v43 = vsub.s32 1, %v134_v40  ;;  %s247_s11 = sshll.u32 %s363_s4, 4  ;;  %s248_s11 = int_to_ptr.vmem [resolvable:$true] %s247_s11 }
  0x19   :  { %276 = vmatmul.mubr.msk.bf16.vlgmr.msra.gmra.mrb[0].mxu0 %vm51_vm2, %v286_v3  ;;  %s331_s12 = scalar_lea.vmem %s248_s11, 256  ;;  %p336_p9 = scmp.lt.s32.totalorder %s248_s11, %s248_s11 }
  0x1a   :  { %170 = vmatpush1.bf16.msra.mxu1 %v292_v7  ;;  %v136_v44 = vrot.slane %v131_v42, %v135_v41  ;;  %v140_v45 = vrot.slane %v131_v42, %v139_v43  ;;  %p332_p8 = scmp.ne.s32.totalorder %s248_s11, %s331_s12  ;;  %p337_p10 = scmp.lt.s32.totalorder %s331_s12, %s331_s12 }
  0x1c   :  { %p338_p11 = por %p337_p10, %p336_p9 }
  0x1e   :  { %p339_p12 = pnand %p338_p11, %p332_p8 }
  0xec   :  { %v93_v10 = vpop.f32.mrb[0].mxu0 }
  0xed   :  { %v94_v11 = vadd.f32 %v259_v9, %v93_v10  ;;  %v277_v12 = vpop.f32.mrb[1].mxu0 }
  0xee   :  { %v96_v13 = vpop.f32.mrb[2].mxu0 }
  0xef   :  { %v102_v14 = vmul.f32 1.442695, %v94_v11  ;;  %v97_v15 = vadd.f32 %v259_v9, %v96_v13  ;;  %v278_v16 = vpop.f32.mrb[3].mxu0  ;;  %vm100_vm5 = vcmp.gt.f32.partialorder %v94_v11, 20.0 }
  0xf1   :  { %293 = vpow2.f32 %v102_v14  ;;  %v104_v17 = vmul.f32 1.442695, %v97_v15  ;;  %vm101_vm6 = vcmp.gt.f32.partialorder %v97_v15, 20.0 }
  0xf3   :  { %295 = vpow2.f32 %v104_v17 }
  0xfb   :  { %v294_v18 = vpop.eup %293 }
  0xfc   :  { %v106_v19 = vadd.f32 1.0, %v294_v18  ;;  %v109_v22 = vmul.f32 -0.5, %v294_v18  ;;  %v112_v25 = vand.u32 2147483647, %v294_v18 }
  0xfd   :  { %v296_v20 = vpop.eup %295 }
  0xfe   :  { %297 = vlog2.f32 %v106_v19  ;;  %v115_v21 = vadd.f32 1.0, %v296_v20  ;;  %v118_v23 = vmul.f32 -0.5, %v296_v20  ;;  %v110_v24 = vadd.f32 1.0, %v109_v22 }
  0xff   :  { %v121_v28 = vand.u32 2147483647, %v296_v20  ;;  %vm113_vm3 = vcmp.lt.f32.partialorder %v112_v25, 0.0004427343 }
 0x100   :  { %299 = vlog2.f32 %v115_v21  ;;  %v119_v26 = vadd.f32 1.0, %v118_v23  ;;  %v111_v30 = vmul.f32 %v294_v18, %v110_v24 }
 0x101   :  { %vm122_vm4 = vcmp.lt.f32.partialorder %v121_v28, 0.0004427343 }
 0x102   :  { %v120_v34 = vmul.f32 %v296_v20, %v119_v26 }
 0x108   :  { %v298_v27 = vpop.eup %297 }
 0x109   :  { %v108_v29 = vmul.f32 0.6931472, %v298_v27 }
 0x10a   :  { %v300_v31 = vpop.eup %299 }
 0x10b   :  { %v114_v32 = vsel %vm113_vm3, %v111_v30, %v108_v29  ;;  %v117_v33 = vmul.f32 0.6931472, %v300_v31 }
 0x10c   :  { %v124_v36 = vsel %vm100_vm5, %v94_v11, %v114_v32 }
 0x10d   :  { %v123_v35 = vsel %vm122_vm4, %v120_v34, %v117_v33 }
 0x10e   :  { %v125_v37 = vsel %vm101_vm6, %v97_v15, %v123_v35 }
 0x10f   :  { %v126_v38 = vpack.c.bf16 %v125_v37, %v124_v36 }
 0x111   :  { %266 = vmatmul.mubr.msk.bf16.vlgmr.msra.gmra.mrb[0].mxu1 %vm163_vm7, %v126_v38 }
 0x1e4   :  { %v201_v46 = vpop.f32.mrb[0].mxu1 }
 0x1e5   :  { %v202_v47 = vadd.f32 %v201_v46, %v136_v44  ;;  %v203_v48 = vpop.f32.mrb[1].mxu1 }
 0x1e6   :  { %v204_v49 = vadd.f32 %v203_v48, %v140_v45  ;;  %v205_v50 = vpop.f32.mrb[2].mxu1 }
 0x1e7   :  { %v210_v51 = vmul.f32 0.5, %v202_v47  ;;  %v206_v52 = vadd.f32 %v205_v50, %v136_v44  ;;  %v207_v53 = vpop.f32.mrb[3].mxu1 }
 0x1e8   :  { %v211_v54 = vmul.f32 0.5, %v204_v49  ;;  %v208_v55 = vadd.f32 %v207_v53, %v140_v45 }
 0x1e9   :  { %301 = vtanh.f32 %v210_v51  ;;  %v212_v56 = vmul.f32 0.5, %v206_v52 }
 0x1ea   :  { %303 = vtanh.f32 %v211_v54  ;;  %v213_v57 = vmul.f32 0.5, %v208_v55 }
 0x1eb   :  { %305 = vtanh.f32 %v212_v56 }
 0x1ec   :  { %307 = vtanh.f32 %v213_v57 }
 0x1f3   :  { %v302_v58 = vpop.eup %301 }
 0x1f4   :  { %v304_v59 = vpop.eup %303  ;;  %v218_v60 = vadd.f32 1.0, %v302_v58 }
 0x1f5   :  { %v306_v61 = vpop.eup %305  ;;  %v219_v62 = vadd.f32 1.0, %v304_v59 }
 0x1f6   :  { %v308_v63 = vpop.eup %307  ;;  %v222_v0 = vmul.f32 0.5, %v218_v60  ;;  %v220_v1 = vadd.f32 1.0, %v306_v61 }
 0x1f7   :  { %v223_v2 = vmul.f32 0.5, %v219_v62  ;;  %v221_v3 = vadd.f32 1.0, %v308_v63 }
 0x1f8   :  { %v224_v4 = vmul.f32 0.5, %v220_v1 }
 0x1f9   :  { %v269_v5 = vpack.c.bf16 %v223_v2, %v222_v0  ;;  %v225_v6 = vmul.f32 0.5, %v221_v3 }
 0x1fb   :  { %240 = vst.msk [vmem:[#allocation5] sm:$0xff] %vm239_vm9, %v269_v5  ;;  %v270_v7 = vpack.c.bf16 %v225_v6, %v224_v4 }
 0x1fd   :  { %241 = vst.msk [vmem:[#allocation5 + $0x8] sm:$0xff] %vm239_vm9, %v270_v7 }
 0x1fe   :  { %342 = shalt.err (!%p339_p12)
}
 0x1ff   :  { %s343_s15 = scalar_lea.hbm %s443_s5, 256 }
 0x200   :  { %p344_p13 = scmp.ne.s32.totalorder %s443_s5, %s343_s15  ;;  %p347_p0 = scmp.lt.u32.totalorder %s343_s15, %s443_s5 }
 0x202   :  { %p349_p1 = pnand %p347_p0, %p344_p13 }
 0x204   :  { %352 = shalt.err (!%p349_p1)
}
 0x205   :  { %253 = dma.vmem_to_hbm [thread:$0]  %s248_s11, 256, %s443_s5, [#allocation4], %s358_s28, %s358_s28, %s359_s29  }
 0x206   :  { %355 = dma.done.wait [#allocation4], 256  }
 0x207   :  { %356 = vsyncadd [#allocation4], 4294967040 }
 0x208   :  { %257 = vsyncpa [#allocation3], 1 }
 0x209   :  { %258 = vsyncpa [#allocation4], 1 }

</bundles_post_ra>
